<compile_context>
chip_gen: v7x
topology: tpu7x:2x2x1
jax: 0.10.0
libtpu: 0.0.40
codegen_flags: <defaults>
</compile_context>

<pallas_src>
import functools

import jax
import jax.numpy as jnp
import numpy as np
from jax.experimental import pallas as pl
from jax.experimental.pallas import tpu as pltpu

_LANES = 128
_SUBLANES = 8
_MIB = 1024 * 1024

_PIPELINE_BUFFERS = 3      # size tiles for up to triple-buffered inputs
_TEMP_F32_ARRAYS = 10      # generous bound on live (tb, W) 32-bit kernel temporaries


def _round_up(x, m):
    return ((x + m - 1) // m) * m


def _tpu_vmem_capacity_bytes():
    try:
        cap = getattr(pltpu.get_tpu_info(), "vmem_capacity_bytes", None)
        if cap:
            return int(cap)
    except Exception:
        pass
    return 64 * _MIB       # conservative fallback: v7x per-TensorCore capacity


def _masked_terms(logp, rew, seq, *, end_idx, seg, rows_per_phys, n_rows, row_offset):
    """Per-element (num, den) contributions for one (tb, W) tile.

    Each physical row of width W holds `rows_per_phys` original sequences of
    length `seg` laid out back-to-back along the lane axis (rows_per_phys == 1
    is the plain, unfolded layout).  A token is kept iff no '<end>' occurs
    strictly before it within its own sequence and its original row is < n_rows.
    """
    tb, W = seq.shape
    col = jax.lax.broadcasted_iota(jnp.int32, (tb, W), 1)
    row = jax.lax.broadcasted_iota(jnp.int32, (tb, W), 0)
    is_end = seq == end_idx

    if rows_per_phys == 1:
        # First '<end>' per row via a cheap min-reduce (XLU); no MXU needed.
        first_end = jnp.min(jnp.where(is_end, col, seg), axis=-1, keepdims=True)
        keep = col <= first_end
        orig_row = row_offset + row
    else:
        # Folded layout: several sequences share one 128-lane row.  Count the
        # '<end>'s strictly before each position *within its own segment* with
        # one constant block-strictly-upper-triangular bf16 matmul (exact small
        # integer counts).  MXU is idle here, so this is free in the DMA-bound
        # regime; seg is a power of two (divisor of 128) so // lowers to shifts.
        a = jax.lax.broadcasted_iota(jnp.int32, (W, W), 0)
        b = jax.lax.broadcasted_iota(jnp.int32, (W, W), 1)
        upper = jnp.logical_and((a // seg) == (b // seg), a < b).astype(jnp.bfloat16)
        prior_ends = jnp.dot(is_end.astype(jnp.bfloat16), upper,
                             preferred_element_type=jnp.float32)
        keep = prior_ends < 0.5
        orig_row = (row_offset + row) * rows_per_phys + col // seg

    # Rows beyond the true batch (cdiv padding of the last tile) are dropped.
    keep = jnp.logical_and(keep, orig_row < n_rows)

    # jnp.where (not multiply-by-mask) so garbage / NaN in padded rows cannot leak.
    num = jnp.where(keep, -logp * rew, 0.0)
    den = jnp.where(keep, 1.0, 0.0)
    return num, den


def _fused_kernel(logp_ref, rew_ref, seq_ref, out_ref, num_acc, den_acc, *,
                  end_idx, seg, rows_per_phys, n_rows, tb):
    """Single-TC form: resident num/den accumulators, loss written at the end."""
    i = pl.program_id(0)

    @pl.when(i == 0)
    def _init():
        num_acc[...] = jnp.zeros_like(num_acc)
        den_acc[...] = jnp.zeros_like(den_acc)

    num, den = _masked_terms(
        logp_ref[...].astype(jnp.float32),
        rew_ref[...].astype(jnp.float32),
        seq_ref[...],
        end_idx=end_idx, seg=seg, rows_per_phys=rows_per_phys,
        n_rows=n_rows, row_offset=i * tb)
    num_acc[...] += jnp.sum(num, axis=0, keepdims=True)
    den_acc[...] += jnp.sum(den, axis=0, keepdims=True)

    @pl.when(i == pl.num_programs(0) - 1)
    def _finalize():
        loss = jnp.sum(num_acc[...]) / jnp.sum(den_acc[...])
        out_ref[...] = jnp.full(out_ref.shape, loss, dtype=jnp.float32)


def _partials_kernel(logp_ref, rew_ref, seq_ref, out_ref, *,
                     end_idx, seg, rows_per_phys, n_rows, tb):
    """Multi-TC form: each grid step writes its own lane-dense (num, den) block."""
    i = pl.program_id(0)
    num, den = _masked_terms(
        logp_ref[...].astype(jnp.float32),
        rew_ref[...].astype(jnp.float32),
        seq_ref[...],
        end_idx=end_idx, seg=seg, rows_per_phys=rows_per_phys,
        n_rows=n_rows, row_offset=i * tb)
    sub = jax.lax.broadcasted_iota(jnp.int32, (_SUBLANES, _LANES), 0)
    out_ref[0] = jnp.where(sub == 0, jnp.sum(num),
                           jnp.where(sub == 1, jnp.sum(den), 0.0))


def _pick_rows_per_step(b_phys, per_row_bytes, budget_bytes, align, min_steps,
                        max_rows_per_step=None):
    """Largest alignment-friendly physical-row tile that fits the VMEM budget."""
    tb = max(1, budget_bytes // per_row_bytes)
    if max_rows_per_step is not None:
        tb = min(tb, max_rows_per_step)
    if min_steps > 1:
        tb = min(tb, -(-b_phys // min_steps))   # ensure >= min_steps grid steps
    if tb >= b_phys:
        return b_phys                            # single full-array block
    tb = max(align, (tb // align) * align)
    return min(tb, b_phys)


def _input_block_spec(tb, W, n_steps):
    if n_steps >= 4:
        # Many small steps: nothing in the body hides DMA start latency, so a
        # third buffer is ~free once the VMEM accounting leaves room for it.
        try:
            return pl.BlockSpec((tb, W), lambda i: (i, 0),
                                pipeline_mode=pl.Buffered(3))
        except (TypeError, AttributeError):
            pass
    return pl.BlockSpec((tb, W), lambda i: (i, 0))


def reward_criterion(log_probs, rewards, sample_seqs, vocab, *,
                     _max_rows_per_step=None, _force_structure=None):
    """Pallas-backed equivalent of RewardCriterion.forward (returns a scalar)."""
    end_idx = int(vocab['<end>'])
    _ = vocab['<pad>']          # read (as the PyTorch module does) but unused

    B, T = log_probs.shape
    if B == 0 or T == 0:        # 0/0 in the reference module
        return jnp.array(jnp.nan, dtype=jnp.float32)

    # ---- layout: fold k short sequences into one 128-lane row when free ----
    k = 1
    if T < _LANES and _LANES % T == 0 and B % (_LANES // T) == 0:
        k = _LANES // T         # row-major reshape is a free bitcast (no copy)
    W = T * k
    b_phys = B // k
    if k > 1:
        log_probs = log_probs.reshape(b_phys, W)
        rewards = rewards.reshape(b_phys, W)
        sample_seqs = sample_seqs.reshape(b_phys, W)

    # ---- per-generation VMEM budget & grid layout ----
    vmem_cap = _tpu_vmem_capacity_bytes()
    single_core_chip = vmem_cap >= 100 * _MIB      # v5e/v6e: 128 MiB, 1 TC
    if single_core_chip:
        usage_budget, vmem_limit, min_steps = 80 * _MIB, 100 * _MIB, 1
    else:                                          # v7x: 64 MiB per TC, 2 TCs
        usage_budget, vmem_limit, min_steps = 36 * _MIB, 48 * _MIB, 2
    use_fused = single_core_chip if _force_structure is None else (
        _force_structure == "fused")

    itemsizes = [jnp.dtype(x.dtype).itemsize
                 for x in (log_probs, rewards, sample_seqs)]
    # tb must not split packed sublane groups of the narrowest input dtype.
    align = max([_SUBLANES] + [_SUBLANES * (4 // s) for s in itemsizes if s <= 4])
    w_pad = _round_up(W, _LANES)                   # lane padding of the VMEM tile
    per_row = (_PIPELINE_BUFFERS * w_pad * sum(itemsizes)     # pipelined inputs
               + _TEMP_F32_ARRAYS * 4 * w_pad)                # kernel temporaries
    tb = _pick_rows_per_step(b_phys, per_row, usage_budget - _MIB, align,
                             min_steps, _max_rows_per_step)
    grid_b = pl.cdiv(b_phys, tb)

    in_spec = _input_block_spec(tb, W, grid_b)
    in_specs = [in_spec, in_spec, in_spec]
    common = dict(end_idx=end_idx, seg=T, rows_per_phys=k, n_rows=B, tb=tb)

    if use_fused:
        out = pl.pallas_call(
            functools.partial(_fused_kernel, **common),
            out_shape=jax.ShapeDtypeStruct((_SUBLANES, _LANES), jnp.float32),
            grid_spec=pltpu.PrefetchScalarGridSpec(
                num_scalar_prefetch=0,
                grid=(grid_b,),
                in_specs=in_specs,
                out_specs=pl.BlockSpec((_SUBLANES, _LANES), lambda i: (0, 0)),
                scratch_shapes=[pltpu.VMEM((1, W), jnp.float32),
                                pltpu.VMEM((1, W), jnp.float32)]),
            compiler_params=pltpu.CompilerParams(
                dimension_semantics=("arbitrary",),
                vmem_limit_bytes=vmem_limit),
        )(log_probs, rewards, sample_seqs)
        return out[0, 0]

    partials = pl.pallas_call(
        functools.partial(_partials_kernel, **common),
        out_shape=jax.ShapeDtypeStruct((grid_b, _SUBLANES, _LANES), jnp.float32),
        grid_spec=pltpu.PrefetchScalarGridSpec(
            num_scalar_prefetch=0,
            grid=(grid_b,),
            in_specs=in_specs,
            out_specs=pl.BlockSpec((1, _SUBLANES, _LANES), lambda i: (i, 0, 0))),
        compiler_params=pltpu.CompilerParams(
            dimension_semantics=("parallel",),     # batch tiles are independent
            vmem_limit_bytes=vmem_limit),
    )(log_probs, rewards, sample_seqs)
    return jnp.sum(partials[:, 0, 0]) / jnp.sum(partials[:, 1, 0])


def reward_criterion_ref(log_probs, rewards, sample_seqs, vocab):
    """Pure-JAX reference (intended semantics of the PyTorch module)."""
    end_idx = vocab['<end>']
    log_probs = log_probs.astype(jnp.float32)
    rewards = rewards.astype(jnp.float32)
    is_end = (sample_seqs == end_idx).astype(jnp.float32)
    prior = jnp.cumsum(is_end, axis=-1) - is_end        # ends strictly before j
    mask = (prior == 0).astype(jnp.float32)
    return jnp.sum(-log_probs * rewards * mask) / jnp.sum(mask)


def _make_inputs(key, B, T, V, dtype, vocab):
    k1, k2, k3 = jax.random.split(key, 3)
    lp = -jnp.abs(jax.random.normal(k1, (B, T), dtype=jnp.float32)).astype(dtype)
    rw = jax.random.normal(k2, (B, T), dtype=jnp.float32).astype(dtype)
    sq = jax.random.randint(k3, (B, T), 0, V, dtype=jnp.int32)
    sq = sq.at[0, min(3, T - 1)].set(vocab['<end>'])   # ensure one mid-seq <end>
    return lp, rw, sq


def _check(name, lp, rw, sq, vocab, tol=1e-5, **kw):
    loss = jax.block_until_ready(reward_criterion(lp, rw, sq, vocab, **kw))
    ref = reward_criterion_ref(lp, rw, sq, vocab)
    assert np.allclose(np.asarray(loss), np.asarray(ref), rtol=tol, atol=tol), (
        name, float(loss), float(ref))


if __name__ == "__main__":
    vocab = {'<pad>': 0, '<end>': 1}
    key = jax.random.PRNGKey(0)

    # Small canonical shape from the module (batch=2, seq=8), f32, unfolded path.
    lp, rw, sq = _make_inputs(jax.random.PRNGKey(0), 2, 8, 11, jnp.float32, vocab)
    _check("small", lp, rw, sq, vocab)

    # Ragged grid + multi-step reduction: T=24 cannot fold; cap rows/step to 8.
    lp, rw, sq = _make_inputs(jax.random.PRNGKey(1), 20, 24, 11, jnp.float32, vocab)
    _check("ragged", lp, rw, sq, vocab, _max_rows_per_step=8)

    # Lane-folded path: T=16 -> 8 sequences per 128-lane row (single block).
    lp, rw, sq = _make_inputs(jax.random.PRNGKey(2), 64, 16, 11, jnp.float32, vocab)
    _check("folded", lp, rw, sq, vocab)

    # Lane-folded + ragged multi-step (9 physical rows, 8 per step).
    lp, rw, sq = _make_inputs(jax.random.PRNGKey(3), 72, 16, 11, jnp.float32, vocab)
    _check("folded_ragged", lp, rw, sq, vocab, _max_rows_per_step=8)

    # Native bf16 activations: no wrapper upcast, cast happens inside the kernel.
    lp, rw, sq = _make_inputs(jax.random.PRNGKey(4), 2, 8, 11, jnp.bfloat16, vocab)
    _check("bf16", lp, rw, sq, vocab, tol=1e-4)

    # Exercise both kernel structures regardless of which chip we run on
    # (budgets stay hardware-derived; only the grid/output structure is forced).
    lp, rw, sq = _make_inputs(jax.random.PRNGKey(5), 16, 8, 11, jnp.float32, vocab)
    _check("forced_fused", lp, rw, sq, vocab, _force_structure="fused")
    _check("forced_partials", lp, rw, sq, vocab, _force_structure="partials")

    print("KERNEL_OK")
</pallas_src>

<mosaic_0001>
module attributes {stable_mosaic.version = 11 : i64} {
  func.func @_partials_kernel(%arg0: i32, %arg1: memref<2x8xf32, #tpu.memory_space<vmem>>, %arg2: memref<2x8xf32, #tpu.memory_space<vmem>>, %arg3: memref<2x8xi32, #tpu.memory_space<vmem>>, %arg4: memref<1x8x128xf32, #tpu.memory_space<vmem>>) attributes {dimension_semantics = [#tpu.dimension_semantics<parallel>], iteration_bounds = array<i64: 1>, scalar_prefetch = 0 : i64, scratch_operands = 0 : i64, tpu.core_type = #tpu.core_type<tc>, window_params = [{transform_indices = @transform_0, window_bounds = array<i64: 2, 8>}, {transform_indices = @transform_1, window_bounds = array<i64: 2, 8>}, {transform_indices = @transform_2, window_bounds = array<i64: 2, 8>}, {transform_indices = @transform_3, window_bounds = array<i64: 1, 8, 128>}]} {
    %c0 = arith.constant 0 : index
    %c0_0 = arith.constant 0 : index
    %0 = vector.load %arg1[%c0, %c0_0] : memref<2x8xf32, #tpu.memory_space<vmem>>, vector<2x8xf32>
    %c0_1 = arith.constant 0 : index
    %c0_2 = arith.constant 0 : index
    %1 = vector.load %arg2[%c0_1, %c0_2] : memref<2x8xf32, #tpu.memory_space<vmem>>, vector<2x8xf32>
    %c0_3 = arith.constant 0 : index
    %c0_4 = arith.constant 0 : index
    %2 = vector.load %arg3[%c0_3, %c0_4] : memref<2x8xi32, #tpu.memory_space<vmem>>, vector<2x8xi32>
    %c2_i32 = arith.constant 2 : i32
    %3 = arith.muli %arg0, %c2_i32 : i32
    %4 = tpu.iota {dimensions = array<i32: 1>} : vector<2x8xi32>
    %5 = tpu.iota {dimensions = array<i32: 0>} : vector<2x8xi32>
    %c1_i32 = arith.constant 1 : i32
    %6 = vector.broadcast %c1_i32 : i32 to vector<2x8xi32>
    %7 = arith.cmpi eq, %2, %6 : vector<2x8xi32>
    %c8_i32 = arith.constant 8 : i32
    %8 = vector.broadcast %c8_i32 : i32 to vector<2x8xi32>
    %9 = arith.select %7, %4, %8 : vector<2x8xi1>, vector<2x8xi32>
    %cst = arith.constant dense<2147483647> : vector<2xi32>
    %10 = vector.multi_reduction <minsi>, %9, %cst [1] : vector<2x8xi32> to vector<2xi32>
    %11 = vector.shape_cast %10 : vector<2xi32> to vector<2x1xi32>
    %12 = vector.broadcast %11 : vector<2x1xi32> to vector<2x8xi32>
    %13 = arith.cmpi sle, %4, %12 : vector<2x8xi32>
    %14 = vector.broadcast %3 : i32 to vector<2x8xi32>
    %15 = arith.addi %14, %5 : vector<2x8xi32>
    %c2_i32_5 = arith.constant 2 : i32
    %16 = vector.broadcast %c2_i32_5 : i32 to vector<2x8xi32>
    %17 = arith.cmpi slt, %15, %16 : vector<2x8xi32>
    %18 = arith.andi %13, %17 : vector<2x8xi1>
    %cst_6 = arith.constant 0.000000e+00 : f32
    %19 = vector.broadcast %cst_6 : f32 to vector<2x8xf32>
    %20 = arith.subf %19, %0 : vector<2x8xf32>
    %21 = arith.mulf %20, %1 : vector<2x8xf32>
    %cst_7 = arith.constant 0.000000e+00 : f32
    %22 = vector.broadcast %cst_7 : f32 to vector<2x8xf32>
    %23 = arith.select %18, %21, %22 : vector<2x8xi1>, vector<2x8xf32>
    %cst_8 = arith.constant 1.000000e+00 : f32
    %cst_9 = arith.constant 0.000000e+00 : f32
    %24 = vector.broadcast %cst_8 : f32 to vector<2x8xf32>
    %25 = vector.broadcast %cst_9 : f32 to vector<2x8xf32>
    %26 = arith.select %18, %24, %25 : vector<2x8xi1>, vector<2x8xf32>
    %27 = tpu.iota {dimensions = array<i32: 0>} : vector<8x128xi32>
    %c0_i32 = arith.constant 0 : i32
    %28 = vector.broadcast %c0_i32 : i32 to vector<8x128xi32>
    %29 = arith.cmpi eq, %27, %28 : vector<8x128xi32>
    %30 = vector.shape_cast %23 : vector<2x8xf32> to vector<1x2x8xf32>
    %cst_10 = arith.constant dense<0.000000e+00> : vector<1xf32>
    %31 = vector.multi_reduction <add>, %30, %cst_10 [1, 2] : vector<1x2x8xf32> to vector<1xf32>
    %32 = vector.shape_cast %31 : vector<1xf32> to vector<1x1x1xf32>
    %33 = vector.extract %32[0, 0, 0] : f32 from vector<1x1x1xf32>
    %c1_i32_11 = arith.constant 1 : i32
    %34 = vector.broadcast %c1_i32_11 : i32 to vector<8x128xi32>
    %35 = arith.cmpi eq, %27, %34 : vector<8x128xi32>
    %36 = vector.shape_cast %26 : vector<2x8xf32> to vector<1x2x8xf32>
    %cst_12 = arith.constant dense<0.000000e+00> : vector<1xf32>
    %37 = vector.multi_reduction <add>, %36, %cst_12 [1, 2] : vector<1x2x8xf32> to vector<1xf32>
    %38 = vector.shape_cast %37 : vector<1xf32> to vector<1x1x1xf32>
    %39 = vector.extract %38[0, 0, 0] : f32 from vector<1x1x1xf32>
    %cst_13 = arith.constant 0.000000e+00 : f32
    %40 = vector.broadcast %39 : f32 to vector<8x128xf32>
    %41 = vector.broadcast %cst_13 : f32 to vector<8x128xf32>
    %42 = arith.select %35, %40, %41 : vector<8x128xi1>, vector<8x128xf32>
    %43 = vector.broadcast %33 : f32 to vector<8x128xf32>
    %44 = arith.select %29, %43, %42 : vector<8x128xi1>, vector<8x128xf32>
    %c0_14 = arith.constant 0 : index
    %c0_15 = arith.constant 0 : index
    %c0_16 = arith.constant 0 : index
    %45 = vector.load %arg4[%c0_14, %c0_15, %c0_16] : memref<1x8x128xf32, #tpu.memory_space<vmem>>, vector<1x8x128xf32>
    %46 = vector.shape_cast %45 : vector<1x8x128xf32> to vector<8x128xf32>
    %47 = vector.shape_cast %44 : vector<8x128xf32> to vector<1x8x128xf32>
    tpu.vector_store %arg4[%c0_14, %c0_15, %c0_16], %47 {strides = array<i32>} : memref<1x8x128xf32, #tpu.memory_space<vmem>>, vector<1x8x128xf32>,
    return
  }
  func.func @transform_0(%arg0: i32) -> (i32, i32) {
    %c0_i32 = arith.constant 0 : i32
    %c0_i32_0 = arith.constant 0 : i32
    return %arg0, %c0_i32 : i32, i32
  }
  func.func @transform_1(%arg0: i32) -> (i32, i32) {
    %c0_i32 = arith.constant 0 : i32
    %c0_i32_0 = arith.constant 0 : i32
    return %arg0, %c0_i32 : i32, i32
  }
  func.func @transform_2(%arg0: i32) -> (i32, i32) {
    %c0_i32 = arith.constant 0 : i32
    %c0_i32_0 = arith.constant 0 : i32
    return %arg0, %c0_i32 : i32, i32
  }
  func.func @transform_3(%arg0: i32) -> (i32, i32, i32) {
    %c0_i32 = arith.constant 0 : i32
    %c0_i32_0 = arith.constant 0 : i32
    %c0_i32_1 = arith.constant 0 : i32
    return %arg0, %c0_i32, %c0_i32_0 : i32, i32, i32
  }
}

</mosaic_0001>

<bundles_post_ra>
// kernel: tpu_custom_call.1
= control target key start
LH: loop header
LB: loop body
LE: loop exit
PB: predicated region body
PF: predicated region fallthrough
CT: control target
= control target key end

     0   :  { %8 = vsyncpa [#allocation3], 0  ;;  %s215_s0 = inlined_call_operand.hbm [shape: f32[2,8], index: 0, kind: input, shape index: {}]   ;;  %s216_s1 = inlined_call_operand.vmem [shape: f32[2,8], index: 1, kind: input, shape index: {}]   ;;  %s217_s2 = inlined_call_operand.vmem [shape: s32[2,8], index: 2, kind: input, shape index: {}]   ;;  %s218_s3 = inlined_call_operand.hbm [shape: f32[1,8,128], index: 3, kind: output, shape index: {}]  }
   0x1   :  { %9 = vsyncpa [#allocation4], 0  ;;  %s159_s12 = smov [#allocation2]   ;;  %s111_s16 = scalar_lea.hbm %s215_s0, 32 }
   0x2   :  { %s16_s13 = sshll.u32 %s159_s12, 4  ;;  %p112_p0 = scmp.ne.s32.totalorder %s215_s0, %s111_s16  ;;  %s17_s13 = int_to_ptr.vmem [resolvable:$true] %s16_s13 }
   0x3   :  { %p115_p1 = scmp.lt.u32.totalorder %s111_s16, %s215_s0 }
   0x5   :  { %p117_p2 = pnand %p115_p1, %p112_p0 }
   0x7   :  { %120 = shalt.err (!%p117_p2)
}
   0x8   :  { %s121_s21 = scalar_lea.vmem %s17_s13, 32  ;;  %p126_p4 = scmp.lt.s32.totalorder %s17_s13, %s17_s13 }
   0x9   :  { %p122_p3 = scmp.ne.s32.totalorder %s17_s13, %s121_s21  ;;  %p127_p5 = scmp.lt.s32.totalorder %s121_s21, %s121_s21 }
   0xb   :  { %p128_p6 = por %p127_p5, %p126_p4 }
   0xd   :  { %p129_p7 = pnand %p128_p6, %p122_p3 }
   0xf   :  { %132 = shalt.err (!%p129_p7)
}
  0x10   :  { %19 = dma.hbm_to_vmem [thread:$0]  %s215_s0, 32, %s17_s13, [#allocation3]  }
  0x11   :  { %155 = dma.done.wait [#allocation3], 32  }
  0x12   :  { %156 = vsyncadd [#allocation3], 4294967264  ;;  %v31_v0 = vlaneseq  ;;  %v29_v2 = vld [vmem:[%s217_s2] sm:$0x3]  ;;  %vm37_vm0 = vcmask 58368   ;;  %v160_v23 = vmov 0.0  }
  0x13   :  { %vm35_vm1 = vcmp.eq.s32.totalorder %v29_v2, 1  ;;  %v27_v11 = vld [vmem:[#allocation2] sm:$0x3]  ;;  %s161_s26 = smov [#allocation5]  }
  0x14   :  { %v32_v1 = vand.u32 127, %v31_v0  ;;  %v34_v13 = vshrl.u32 %v31_v0, 7  ;;  %v58_v14 = vsub.f32 0.0, %v27_v11  ;;  %v28_v16 = vld [vmem:[%s216_s1] sm:$0x3]  ;;  %s95_s27 = sshll.u32 %s161_s26, 4  ;;  %s96_s27 = int_to_ptr.vmem [resolvable:$true] %s95_s27 }
  0x15   :  { %s133_s29 = scalar_lea.vmem %s96_s27, 128  ;;  %p138_p9 = scmp.lt.s32.totalorder %s96_s27, %s96_s27 }
  0x16   :  { %v36_v3 = vsel %vm35_vm1, %v32_v1, 8  ;;  %vm56_vm3 = vcmp.lt.s32.totalorder %v34_v13, 2  ;;  %v59_v20 = vmul.f32 %v58_v14, %v28_v16  ;;  %vm73_vm6 = vcmp.eq.s32.totalorder %v34_v13, 1  ;;  %p134_p8 = scmp.ne.s32.totalorder %s96_s27, %s133_s29  ;;  %p139_p10 = scmp.lt.s32.totalorder %s133_s29, %s133_s29 }
  0x17   :  { %v38_v4 = vsel %vm37_vm0, %v36_v3, 2147483647  ;;  %vm62_vm7 = vcmp.eq.s32.totalorder %v34_v13, 0 }
  0x18   :  { %v40_v5 = vshra.s32 %v38_v4, 16  ;;  %v39_v7 = vand.u32 65535, %v38_v4  ;;  %p140_p11 = por %p139_p10, %p138_p9 }
  0x1a   :  { %v42_v6 = vcvt.s32.f32 %v40_v5  ;;  %v41_v8 = vcvt.s32.f32 %v39_v7  ;;  %p141_p12 = pnand %p140_p11, %p134_p8 }
  0x1c   :  { %43 = vmin.xlane.f32.xlu0 %v42_v6 }
  0xa9   :  { %v44_v9 = vpop.xlane.xlu0 %43 }
  0xaa   :  { %vm45_vm2 = vcmp.eq.f32.partialorder %v42_v6, %v44_v9  ;;  %v50_v12 = vcvt.f32.s32 %v44_v9 }
  0xab   :  { %v46_v10 = vsel %vm45_vm2, %v41_v8, inf }
  0xac   :  { %47 = vmin.xlane.f32.xlu0 %v46_v10  ;;  %v51_v17 = vshll.u32 %v50_v12, 16 }
 0x139   :  { %v48_v15 = vpop.xlane.xlu0 %47 }
 0x13a   :  { %v49_v18 = vcvt.f32.s32 %v48_v15 }
 0x13c   :  { %v52_v19 = vadd.s32 %v51_v17, %v49_v18 }
 0x13e   :  { %vm53_vm4 = vcmp.le.s32.totalorder %v32_v1, %v52_v19 }
 0x13f   :  { %vm57_vm5 = vmand %vm53_vm4, %vm56_vm3 }
 0x140   :  { %v60_v21 = vsel %vm57_vm5, %v59_v20, 0.0  ;;  %v61_v24 = vsel %vm57_vm5, 1.0, %v160_v23 }
 0x141   :  { %v63_v22 = vsel %vm37_vm0, %v60_v21, 0.0  ;;  %v74_v25 = vsel %vm37_vm0, %v61_v24, 0.0 }
 0x142   :  { %64 = vadd.xlane.f32.xlu1 %v63_v22 }
 0x146   :  { %75 = vadd.xlane.f32.xlu1 %v74_v25 }
 0x1cf   :  { %v65_v26 = vpop.xlane.xlu1 %64 }
 0x1d0   :  { %v66_v27 = vrot.slane %v65_v26, 4 }
 0x1d2   :  { %v67_v28 = vadd.f32 %v66_v27, %v65_v26 }
 0x1d3   :  { %v76_v29 = vpop.xlane.xlu1 %75 }
 0x1d4   :  { %v68_v30 = vrot.slane %v67_v28, 2  ;;  %v77_v31 = vrot.slane %v76_v29, 4 }
 0x1d6   :  { %v78_v32 = vadd.f32 %v77_v31, %v76_v29  ;;  %v69_v33 = vadd.f32 %v68_v30, %v67_v28 }
 0x1d8   :  { %v79_v34 = vrot.slane %v78_v32, 2  ;;  %v70_v35 = vrot.slane %v69_v33, 1 }
 0x1da   :  { %v80_v36 = vadd.f32 %v79_v34, %v78_v32  ;;  %v71_v37 = vadd.f32 %v70_v35, %v69_v33 }
 0x1dc   :  { %104 = vpush %v71_v37  ;;  %v81_v38 = vrot.slane %v80_v36, 1 }
 0x1de   :  { %v82_v39 = vadd.f32 %v81_v38, %v80_v36 }
 0x1e0   :  { %106 = vpush %v82_v39 }
 0x20d   :  { %s105_s1 = spop %104 }
 0x20e   :  { %v86_v41 = vstv %s105_s1 }
 0x211   :  { %s107_s28 = spop %106 }
 0x212   :  { %v84_v40 = vstv %s107_s28 }
 0x213   :  { %v85_v42 = vsel %vm73_vm6, %v84_v40, 0.0 }
 0x214   :  { %v87_v43 = vsel %vm62_vm7, %v86_v41, %v85_v42 }
 0x215   :  { %88 = vst [vmem:[#allocation5] sm:$0xff] %v87_v43 }
 0x216   :  { %144 = shalt.err (!%p141_p12)
}
 0x217   :  { %s145_s5 = scalar_lea.hbm %s218_s3, 128 }
 0x218   :  { %p146_p13 = scmp.ne.s32.totalorder %s218_s3, %s145_s5  ;;  %p149_p0 = scmp.lt.u32.totalorder %s145_s5, %s218_s3 }
 0x21a   :  { %p151_p1 = pnand %p149_p0, %p146_p13 }
 0x21c   :  { %154 = shalt.err (!%p151_p1)
}
 0x21d   :  { %98 = dma.vmem_to_hbm [thread:$0]  %s96_s27, 128, %s218_s3, [#allocation4]  }
 0x21e   :  { %157 = dma.done.wait [#allocation4], 128  }
 0x21f   :  { %158 = vsyncadd [#allocation4], 4294967168 }
 0x220   :  { %102 = vsyncpa [#allocation3], 1 }
 0x221   :  { %103 = vsyncpa [#allocation4], 1 }

</bundles_post_ra>
